<compile_context>
chip_gen: v7x
topology: tpu7x:2x2x1
jax: 0.10.0
libtpu: 0.0.40
codegen_flags: <defaults>
</compile_context>

<pallas_src>
import math
import functools

import jax
import jax.numpy as jnp
from jax.experimental import pallas as pl
from jax.experimental.pallas import tpu as pltpu


def _cross_attention_kernel(x_ref, y_ref,
                            wq_ref, bq_ref,
                            wk_ref, bk_ref,
                            wv_ref, bv_ref,
                            wo_ref, bo_ref,
                            o_ref,
                            k_scr, v_scr, acc_scr,
                            *, scale: float):
    qt = pl.program_id(1)   # q-tile index (middle axis, "arbitrary")
    h = pl.program_id(2)    # head index (innermost axis, reduction for out-proj)

    # --- K / V projection: once per (batch, head), at the first q tile --------
    # q-tile axis is sequential per core, so the scratch filled at qt == 0 is
    # valid for every later q tile of the same batch element.
    @pl.when(qt == 0)
    def _():
        y = y_ref[0]                                                  # (Lkv, d_cross)
        k_h = jnp.dot(y, wk_ref[h], preferred_element_type=jnp.float32) + bk_ref[h]
        v_h = jnp.dot(y, wv_ref[h], preferred_element_type=jnp.float32) + bv_ref[h]
        k_scr[h] = k_h.astype(k_scr.dtype)
        v_scr[h] = v_h.astype(v_scr.dtype)

    # --- Q projection for this (q tile, head) ---------------------------------
    x = x_ref[0]                                                      # (tq, E)
    q_h = jnp.dot(x, wq_ref[h], preferred_element_type=jnp.float32) + bq_ref[h]
    q_h = q_h.astype(k_scr.dtype)                                     # (tq, dh)

    k_h = k_scr[h]                                                    # (Lkv, dh)
    v_h = v_scr[h]                                                    # (Lkv, dh)

    # scores: contract the d_head axes directly (MXU consumes the transposed
    # operand for free; no explicit .T / XLU transpose).
    scores = jax.lax.dot_general(
        q_h, k_h,
        dimension_numbers=(((1,), (1,)), ((), ())),
        preferred_element_type=jnp.float32) * scale                   # (tq, Lkv) f32

    # numerically stable softmax over the key axis (f32 math).
    # NOTE: Lkv is never padded/tiled here, so no key-length mask is needed.
    m = jnp.max(scores, axis=-1, keepdims=True)
    p = jnp.exp(scores - m)
    denom = jnp.sum(p, axis=-1, keepdims=True)
    p = p * pl.reciprocal(denom, approx=True)                         # EUP vrcp

    o_h = jnp.dot(p.astype(v_h.dtype), v_h,
                  preferred_element_type=jnp.float32)                 # (tq, dh) f32

    # --- output projection: accumulate this head's contribution ---------------
    @pl.when(h == 0)
    def _():
        acc_scr[...] = jnp.zeros_like(acc_scr)

    acc_scr[...] += jnp.dot(o_h.astype(wo_ref.dtype), wo_ref[h],
                            preferred_element_type=jnp.float32)       # (tq, E)

    @pl.when(h == pl.num_programs(2) - 1)
    def _():
        out = acc_scr[...] + bo_ref[...].astype(jnp.float32)
        o_ref[0] = out.astype(o_ref.dtype)                            # single lane-dense store


def cross_attention(x, y, params, *, n_heads: int,
                    tq_max: int = 256, compute_dtype=jnp.bfloat16):
    """x: (B, Lq, d_embed), y: (B, Lkv, d_cross)."""
    B, Lq, d_embed = x.shape
    _, Lkv, d_cross = y.shape
    assert d_embed % n_heads == 0
    H = n_heads
    dh = d_embed // n_heads
    E = d_embed
    out_dtype = x.dtype

    # --- choose/pad the q tile (q rows are independent; padded rows are sliced off)
    if Lq <= tq_max:
        tq = Lq
        Lq_pad = Lq
    else:
        tq = tq_max                      # multiple of 8 -> valid sublane tile
        Lq_pad = pl.cdiv(Lq, tq) * tq
    if Lq_pad != Lq:
        x = jnp.pad(x, ((0, 0), (0, Lq_pad - Lq), (0, 0)))
    n_qt = Lq_pad // tq

    # --- cast activations/weights to bf16 (f32 accumulation happens in-kernel)
    xc = x.astype(compute_dtype)
    yc = y.astype(compute_dtype)

    # --- pre-split the projection weights head-major (one-time, in the wrapper)
    wq_r = params["wq"].reshape(E, H, dh).transpose(1, 0, 2).astype(compute_dtype)        # (H, E, dh)
    wk_r = params["wk"].reshape(d_cross, H, dh).transpose(1, 0, 2).astype(compute_dtype)  # (H, dc, dh)
    wv_r = params["wv"].reshape(d_cross, H, dh).transpose(1, 0, 2).astype(compute_dtype)  # (H, dc, dh)
    wo_r = params["wo"].reshape(H, dh, E).astype(compute_dtype)                           # (H, dh, E)
    bq_r = params["bq"].reshape(H, 1, dh).astype(compute_dtype)
    bk_r = params["bk"].reshape(H, 1, dh).astype(compute_dtype)
    bv_r = params["bv"].reshape(H, 1, dh).astype(compute_dtype)
    bo_r = params["bo"].reshape(1, E).astype(compute_dtype)

    kernel = functools.partial(_cross_attention_kernel, scale=1.0 / math.sqrt(dh))

    # advisory cost estimate for XLA's scheduler
    flops = int(B * (4 * Lq_pad * E * E          # Q proj + out proj
                     + 4 * Lkv * d_cross * E     # K/V proj
                     + 4 * Lq_pad * Lkv * E))    # scores + PV over all heads
    transcendentals = int(B * H * Lq_pad * Lkv)  # exp
    bpe = jnp.dtype(compute_dtype).itemsize
    bytes_accessed = int(bpe * (B * Lq_pad * E + B * Lkv * d_cross
                                + 2 * E * E + 2 * d_cross * E + 4 * E)
                         + B * Lq_pad * E * jnp.dtype(out_dtype).itemsize)

    # Weights/biases use constant index_maps so they are DMA'd once and stay
    # resident in VMEM.  (They are still double-buffered by default; at SD scale
    # with tq=256 the total footprint stays well inside the scoped VMEM budget.)
    # The q-tile axis must be "arbitrary" because the K/V scratch hoist relies
    # on sequential q tiles per batch; batch stays "parallel" for megacore.
    out = pl.pallas_call(
        kernel,
        out_shape=jax.ShapeDtypeStruct((B, Lq_pad, E), out_dtype),
        grid_spec=pltpu.PrefetchScalarGridSpec(
            num_scalar_prefetch=0,
            grid=(B, n_qt, H),
            in_specs=[
                pl.BlockSpec((1, tq, E), lambda b, q, h: (b, q, 0)),          # x
                pl.BlockSpec((1, Lkv, d_cross), lambda b, q, h: (b, 0, 0)),   # y
                pl.BlockSpec((H, E, dh), lambda b, q, h: (0, 0, 0)),          # wq
                pl.BlockSpec((H, 1, dh), lambda b, q, h: (0, 0, 0)),          # bq
                pl.BlockSpec((H, d_cross, dh), lambda b, q, h: (0, 0, 0)),    # wk
                pl.BlockSpec((H, 1, dh), lambda b, q, h: (0, 0, 0)),          # bk
                pl.BlockSpec((H, d_cross, dh), lambda b, q, h: (0, 0, 0)),    # wv
                pl.BlockSpec((H, 1, dh), lambda b, q, h: (0, 0, 0)),          # bv
                pl.BlockSpec((H, dh, E), lambda b, q, h: (0, 0, 0)),          # wo
                pl.BlockSpec((1, E), lambda b, q, h: (0, 0)),                 # bo
            ],
            out_specs=pl.BlockSpec((1, tq, E), lambda b, q, h: (b, q, 0)),
            scratch_shapes=[
                pltpu.VMEM((H, Lkv, dh), compute_dtype),   # K (all heads, current batch)
                pltpu.VMEM((H, Lkv, dh), compute_dtype),   # V (all heads, current batch)
                pltpu.VMEM((tq, E), jnp.float32),          # out-proj accumulator
            ],
        ),
        compiler_params=pltpu.CompilerParams(
            dimension_semantics=("parallel", "arbitrary", "arbitrary"),
            vmem_limit_bytes=48 * 1024 * 1024),
        cost_estimate=pl.CostEstimate(
            flops=flops, transcendentals=transcendentals,
            bytes_accessed=bytes_accessed),
    )(xc, yc, wq_r, bq_r, wk_r, bk_r, wv_r, bv_r, wo_r, bo_r)

    if Lq_pad != Lq:
        out = out[:, :Lq, :]
    return out


def _reference(x, y, params, n_heads):
    """Pure-JAX reference matching the PyTorch forward (f32 math)."""
    B, Lq, d_embed = x.shape
    d_head = d_embed // n_heads
    q = x @ params["wq"] + params["bq"][0]
    k = y @ params["wk"] + params["bk"][0]
    v = y @ params["wv"] + params["bv"][0]

    def split(t):  # (B, L, E) -> (B, H, L, Dh)
        return t.reshape(B, -1, n_heads, d_head).transpose(0, 2, 1, 3)

    q, k, v = split(q), split(k), split(v)
    w = jnp.einsum("bhqd,bhkd->bhqk", q, k) / math.sqrt(d_head)
    w = jax.nn.softmax(w, axis=-1)
    o = jnp.einsum("bhqk,bhkd->bhqd", w, v)
    o = o.transpose(0, 2, 1, 3).reshape(B, Lq, d_embed)
    return o @ params["wo"] + params["bo"][0]


def init_params(key, d_embed, d_cross):
    ks = jax.random.split(key, 8)

    def lin(kw, kb, fan_in, fan_out):
        bound = 1.0 / math.sqrt(fan_in)
        w = jax.random.uniform(kw, (fan_in, fan_out), jnp.float32, -bound, bound)
        b = jax.random.uniform(kb, (1, fan_out), jnp.float32, -bound, bound)
        return w, b

    wq, bq = lin(ks[0], ks[1], d_embed, d_embed)
    wk, bk = lin(ks[2], ks[3], d_cross, d_embed)
    wv, bv = lin(ks[4], ks[5], d_cross, d_embed)
    wo, bo = lin(ks[6], ks[7], d_embed, d_embed)
    return dict(wq=wq, bq=bq, wk=wk, bk=bk, wv=wv, bv=bv, wo=wo, bo=bo)


if __name__ == "__main__":
    B, Lq, Lkv = 2, 8, 16
    n_heads, d_embed, d_cross = 4, 32, 24

    key = jax.random.PRNGKey(0)
    kx, ky, kp = jax.random.split(key, 3)
    x = jax.random.normal(kx, (B, Lq, d_embed), jnp.float32)
    y = jax.random.normal(ky, (B, Lkv, d_cross), jnp.float32)
    params = init_params(kp, d_embed, d_cross)

    out = cross_attention(x, y, params, n_heads=n_heads)
    out = jax.block_until_ready(out)

    # Compare against an f32 reference fed with the same bf16-quantized
    # inputs/weights the kernel consumes (kernel does f32 accumulation).
    c = lambda t: t.astype(jnp.bfloat16).astype(jnp.float32)
    params_c = {k: c(v) for k, v in params.items()}
    ref = _reference(c(x), c(y), params_c, n_heads)

    assert out.shape == (B, Lq, d_embed)
    err = float(jnp.max(jnp.abs(out.astype(jnp.float32) - ref)))
    assert jnp.allclose(out.astype(jnp.float32), ref, atol=3e-2, rtol=3e-2), (
        f"mismatch vs reference, max abs err = {err}")

    print("KERNEL_OK")
</pallas_src>

<mosaic_0001>
module attributes {stable_mosaic.version = 11 : i64} {
  func.func @_cross_attention_kernel(%arg0: i32, %arg1: i32, %arg2: i32, %arg3: memref<1x8x32xbf16, #tpu.memory_space<vmem>>, %arg4: memref<1x16x24xbf16, #tpu.memory_space<vmem>>, %arg5: memref<4x32x8xbf16, #tpu.memory_space<vmem>>, %arg6: memref<4x1x8xbf16, #tpu.memory_space<vmem>>, %arg7: memref<4x24x8xbf16, #tpu.memory_space<vmem>>, %arg8: memref<4x1x8xbf16, #tpu.memory_space<vmem>>, %arg9: memref<4x24x8xbf16, #tpu.memory_space<vmem>>, %arg10: memref<4x1x8xbf16, #tpu.memory_space<vmem>>, %arg11: memref<4x8x32xbf16, #tpu.memory_space<vmem>>, %arg12: memref<1x32xbf16, #tpu.memory_space<vmem>>, %arg13: memref<1x8x32xf32, #tpu.memory_space<vmem>>, %arg14: memref<4x16x8xbf16, #tpu.memory_space<vmem>>, %arg15: memref<4x16x8xbf16, #tpu.memory_space<vmem>>, %arg16: memref<8x32xf32, #tpu.memory_space<vmem>>) attributes {dimension_semantics = [#tpu.dimension_semantics<parallel>, #tpu.dimension_semantics<arbitrary>, #tpu.dimension_semantics<arbitrary>], iteration_bounds = array<i64: 2, 1, 4>, scalar_prefetch = 0 : i64, scratch_operands = 3 : i64, tpu.core_type = #tpu.core_type<tc>, window_params = [{transform_indices = @transform_0, window_bounds = array<i64: 1, 8, 32>}, {transform_indices = @transform_1, window_bounds = array<i64: 1, 16, 24>}, {pipeline_mode = #tpu.pipeline_mode<synchronous>, transform_indices = @transform_2, window_bounds = array<i64: 4, 32, 8>}, {pipeline_mode = #tpu.pipeline_mode<synchronous>, transform_indices = @transform_3, window_bounds = array<i64: 4, 1, 8>}, {pipeline_mode = #tpu.pipeline_mode<synchronous>, transform_indices = @transform_4, window_bounds = array<i64: 4, 24, 8>}, {pipeline_mode = #tpu.pipeline_mode<synchronous>, transform_indices = @transform_5, window_bounds = array<i64: 4, 1, 8>}, {pipeline_mode = #tpu.pipeline_mode<synchronous>, transform_indices = @transform_6, window_bounds = array<i64: 4, 24, 8>}, {pipeline_mode = #tpu.pipeline_mode<synchronous>, transform_indices = @transform_7, window_bounds = array<i64: 4, 1, 8>}, {pipeline_mode = #tpu.pipeline_mode<synchronous>, transform_indices = @transform_8, window_bounds = array<i64: 4, 8, 32>}, {pipeline_mode = #tpu.pipeline_mode<synchronous>, transform_indices = @transform_9, window_bounds = array<i64: 1, 32>}, {transform_indices = @transform_10, window_bounds = array<i64: 1, 8, 32>}]} {
    %c0_i32 = arith.constant 0 : i32
    %0 = arith.cmpi eq, %arg1, %c0_i32 : i32
    %1 = arith.extui %0 : i1 to i32
    %c0_i32_0 = arith.constant 0 : i32
    %2 = arith.cmpi ne, %1, %c0_i32_0 : i32
    scf.if %2 {
      %c0_26 = arith.constant 0 : index
      %c0_27 = arith.constant 0 : index
      %c0_28 = arith.constant 0 : index
      %51 = vector.load %arg4[%c0_26, %c0_27, %c0_28] : memref<1x16x24xbf16, #tpu.memory_space<vmem>>, vector<1x16x24xbf16>
      %52 = vector.shape_cast %51 : vector<1x16x24xbf16> to vector<16x24xbf16>
      %53 = arith.index_cast %arg2 : i32 to index
      %c0_29 = arith.constant 0 : index
      %c0_30 = arith.constant 0 : index
      %54 = vector.load %arg7[%53, %c0_29, %c0_30] : memref<4x24x8xbf16, #tpu.memory_space<vmem>>, vector<1x24x8xbf16>
      %55 = vector.shape_cast %54 : vector<1x24x8xbf16> to vector<24x8xbf16>
      %cst_31 = arith.constant dense<0.000000e+00> : vector<16x8xf32>
      %56 = tpu.matmul %52, %55, %cst_31 {dimension_numbers = #tpu.dot_dimension_numbers<[1], [0], [0], [1], [0, 0, 1, 1], [], []>} : vector<16x24xbf16>, vector<24x8xbf16>, vector<16x8xf32> -> vector<16x8xf32>
      %57 = arith.index_cast %arg2 : i32 to index
      %c0_32 = arith.constant 0 : index
      %c0_33 = arith.constant 0 : index
      %58 = vector.load %arg8[%57, %c0_32, %c0_33] : memref<4x1x8xbf16, #tpu.memory_space<vmem>>, vector<1x1x8xbf16>
      %59 = vector.shape_cast %58 : vector<1x1x8xbf16> to vector<1x8xbf16>
      %60 = arith.extf %59 : vector<1x8xbf16> to vector<1x8xf32>
      %61 = vector.broadcast %60 : vector<1x8xf32> to vector<16x8xf32>
      %62 = arith.addf %56, %61 : vector<16x8xf32>
      %63 = arith.index_cast %arg2 : i32 to index
      %c0_34 = arith.constant 0 : index
      %c0_35 = arith.constant 0 : index
      %64 = vector.load %arg9[%63, %c0_34, %c0_35] : memref<4x24x8xbf16, #tpu.memory_space<vmem>>, vector<1x24x8xbf16>
      %65 = vector.shape_cast %64 : vector<1x24x8xbf16> to vector<24x8xbf16>
      %cst_36 = arith.constant dense<0.000000e+00> : vector<16x8xf32>
      %66 = tpu.matmul %52, %65, %cst_36 {dimension_numbers = #tpu.dot_dimension_numbers<[1], [0], [0], [1], [0, 0, 1, 1], [], []>} : vector<16x24xbf16>, vector<24x8xbf16>, vector<16x8xf32> -> vector<16x8xf32>
      %67 = arith.index_cast %arg2 : i32 to index
      %c0_37 = arith.constant 0 : index
      %c0_38 = arith.constant 0 : index
      %68 = vector.load %arg10[%67, %c0_37, %c0_38] : memref<4x1x8xbf16, #tpu.memory_space<vmem>>, vector<1x1x8xbf16>
      %69 = vector.shape_cast %68 : vector<1x1x8xbf16> to vector<1x8xbf16>
      %70 = arith.extf %69 : vector<1x8xbf16> to vector<1x8xf32>
      %71 = vector.broadcast %70 : vector<1x8xf32> to vector<16x8xf32>
      %72 = arith.addf %66, %71 : vector<16x8xf32>
      %73 = arith.truncf %62 : vector<16x8xf32> to vector<16x8xbf16>
      %74 = arith.index_cast %arg2 : i32 to index
      %c0_39 = arith.constant 0 : index
      %c0_40 = arith.constant 0 : index
      %75 = vector.load %arg14[%74, %c0_39, %c0_40] : memref<4x16x8xbf16, #tpu.memory_space<vmem>>, vector<1x16x8xbf16>
      %76 = vector.shape_cast %75 : vector<1x16x8xbf16> to vector<16x8xbf16>
      %77 = vector.shape_cast %73 : vector<16x8xbf16> to vector<1x16x8xbf16>
      tpu.vector_store %arg14[%74, %c0_39, %c0_40], %77 {strides = array<i32>} : memref<4x16x8xbf16, #tpu.memory_space<vmem>>, vector<1x16x8xbf16>,
      %78 = arith.truncf %72 : vector<16x8xf32> to vector<16x8xbf16>
      %79 = arith.index_cast %arg2 : i32 to index
      %c0_41 = arith.constant 0 : index
      %c0_42 = arith.constant 0 : index
      %80 = vector.load %arg15[%79, %c0_41, %c0_42] : memref<4x16x8xbf16, #tpu.memory_space<vmem>>, vector<1x16x8xbf16>
      %81 = vector.shape_cast %80 : vector<1x16x8xbf16> to vector<16x8xbf16>
      %82 = vector.shape_cast %78 : vector<16x8xbf16> to vector<1x16x8xbf16>
      tpu.vector_store %arg15[%79, %c0_41, %c0_42], %82 {strides = array<i32>} : memref<4x16x8xbf16, #tpu.memory_space<vmem>>, vector<1x16x8xbf16>,
    } else {
    }
    %c0 = arith.constant 0 : index
    %c0_1 = arith.constant 0 : index
    %c0_2 = arith.constant 0 : index
    %3 = vector.load %arg3[%c0, %c0_1, %c0_2] : memref<1x8x32xbf16, #tpu.memory_space<vmem>>, vector<1x8x32xbf16>
    %4 = vector.shape_cast %3 : vector<1x8x32xbf16> to vector<8x32xbf16>
    %5 = arith.index_cast %arg2 : i32 to index
    %c0_3 = arith.constant 0 : index
    %c0_4 = arith.constant 0 : index
    %6 = vector.load %arg5[%5, %c0_3, %c0_4] : memref<4x32x8xbf16, #tpu.memory_space<vmem>>, vector<1x32x8xbf16>
    %7 = vector.shape_cast %6 : vector<1x32x8xbf16> to vector<32x8xbf16>
    %cst = arith.constant dense<0.000000e+00> : vector<8x8xf32>
    %8 = tpu.matmul %4, %7, %cst {dimension_numbers = #tpu.dot_dimension_numbers<[1], [0], [0], [1], [0, 0, 1, 1], [], []>} : vector<8x32xbf16>, vector<32x8xbf16>, vector<8x8xf32> -> vector<8x8xf32>
    %9 = arith.index_cast %arg2 : i32 to index
    %c0_5 = arith.constant 0 : index
    %c0_6 = arith.constant 0 : index
    %10 = vector.load %arg6[%9, %c0_5, %c0_6] : memref<4x1x8xbf16, #tpu.memory_space<vmem>>, vector<1x1x8xbf16>
    %11 = vector.shape_cast %10 : vector<1x1x8xbf16> to vector<1x8xbf16>
    %12 = arith.extf %11 : vector<1x8xbf16> to vector<1x8xf32>
    %13 = vector.broadcast %12 : vector<1x8xf32> to vector<8x8xf32>
    %14 = arith.addf %8, %13 : vector<8x8xf32>
    %15 = arith.truncf %14 : vector<8x8xf32> to vector<8x8xbf16>
    %16 = arith.index_cast %arg2 : i32 to index
    %c0_7 = arith.constant 0 : index
    %c0_8 = arith.constant 0 : index
    %17 = vector.load %arg14[%16, %c0_7, %c0_8] : memref<4x16x8xbf16, #tpu.memory_space<vmem>>, vector<1x16x8xbf16>
    %18 = vector.shape_cast %17 : vector<1x16x8xbf16> to vector<16x8xbf16>
    %19 = arith.index_cast %arg2 : i32 to index
    %c0_9 = arith.constant 0 : index
    %c0_10 = arith.constant 0 : index
    %20 = vector.load %arg15[%19, %c0_9, %c0_10] : memref<4x16x8xbf16, #tpu.memory_space<vmem>>, vector<1x16x8xbf16>
    %21 = vector.shape_cast %20 : vector<1x16x8xbf16> to vector<16x8xbf16>
    %cst_11 = arith.constant dense<0.000000e+00> : vector<8x16xf32>
    %22 = tpu.matmul %15, %18, %cst_11 {dimension_numbers = #tpu.dot_dimension_numbers<[1], [1], [0], [0], [0, 0, 1, 0], [], []>} : vector<8x8xbf16>, vector<16x8xbf16>, vector<8x16xf32> -> vector<8x16xf32>
    %cst_12 = arith.constant 0.353553385 : f32
    %23 = vector.broadcast %cst_12 : f32 to vector<8x16xf32>
    %24 = arith.mulf %22, %23 : vector<8x16xf32>
    %cst_13 = arith.constant dense<0xFF800000> : vector<8xf32>
    %25 = vector.multi_reduction <maximumf>, %24, %cst_13 [1] : vector<8x16xf32> to vector<8xf32>
    %26 = vector.shape_cast %25 : vector<8xf32> to vector<8x1xf32>
    %27 = vector.broadcast %26 : vector<8x1xf32> to vector<8x16xf32>
    %28 = arith.subf %24, %27 : vector<8x16xf32>
    %29 = math.exp %28 : vector<8x16xf32>
    %cst_14 = arith.constant dense<0.000000e+00> : vector<8xf32>
    %30 = vector.multi_reduction <add>, %29, %cst_14 [1] : vector<8x16xf32> to vector<8xf32>
    %31 = vector.shape_cast %30 : vector<8xf32> to vector<8x1xf32>
    %32 = tpu.reciprocal %31 {approx = true} : vector<8x1xf32> -> vector<8x1xf32>
    %33 = vector.broadcast %32 : vector<8x1xf32> to vector<8x16xf32>
    %34 = arith.mulf %29, %33 : vector<8x16xf32>
    %35 = arith.truncf %34 : vector<8x16xf32> to vector<8x16xbf16>
    %cst_15 = arith.constant dense<0.000000e+00> : vector<8x8xf32>
    %36 = tpu.matmul %35, %21, %cst_15 {dimension_numbers = #tpu.dot_dimension_numbers<[1], [0], [0], [1], [0, 0, 1, 1], [], []>} : vector<8x16xbf16>, vector<16x8xbf16>, vector<8x8xf32> -> vector<8x8xf32>
    %c0_i32_16 = arith.constant 0 : i32
    %37 = arith.cmpi eq, %arg2, %c0_i32_16 : i32
    %38 = arith.extui %37 : i1 to i32
    %c0_i32_17 = arith.constant 0 : i32
    %39 = arith.cmpi ne, %38, %c0_i32_17 : i32
    scf.if %39 {
      %cst_26 = arith.constant 0.000000e+00 : f32
      %51 = vector.broadcast %cst_26 : f32 to vector<8x32xf32>
      %c0_27 = arith.constant 0 : index
      %c0_28 = arith.constant 0 : index
      %52 = vector.load %arg16[%c0_27, %c0_28] : memref<8x32xf32, #tpu.memory_space<vmem>>, vector<8x32xf32>
      tpu.vector_store %arg16[%c0_27, %c0_28], %51 {strides = array<i32>} : memref<8x32xf32, #tpu.memory_space<vmem>>, vector<8x32xf32>,
    } else {
    }
    %c0_18 = arith.constant 0 : index
    %c0_19 = arith.constant 0 : index
    %40 = vector.load %arg16[%c0_18, %c0_19] : memref<8x32xf32, #tpu.memory_space<vmem>>, vector<8x32xf32>
    %41 = arith.truncf %36 : vector<8x8xf32> to vector<8x8xbf16>
    %42 = arith.index_cast %arg2 : i32 to index
    %c0_20 = arith.constant 0 : index
    %c0_21 = arith.constant 0 : index
    %43 = vector.load %arg11[%42, %c0_20, %c0_21] : memref<4x8x32xbf16, #tpu.memory_space<vmem>>, vector<1x8x32xbf16>
    %44 = vector.shape_cast %43 : vector<1x8x32xbf16> to vector<8x32xbf16>
    %cst_22 = arith.constant dense<0.000000e+00> : vector<8x32xf32>
    %45 = tpu.matmul %41, %44, %cst_22 {dimension_numbers = #tpu.dot_dimension_numbers<[1], [0], [0], [1], [0, 0, 1, 1], [], []>} : vector<8x8xbf16>, vector<8x32xbf16>, vector<8x32xf32> -> vector<8x32xf32>
    %46 = arith.addf %40, %45 : vector<8x32xf32>
    %c0_23 = arith.constant 0 : index
    %c0_24 = arith.constant 0 : index
    %47 = vector.load %arg16[%c0_23, %c0_24] : memref<8x32xf32, #tpu.memory_space<vmem>>, vector<8x32xf32>
    tpu.vector_store %arg16[%c0_23, %c0_24], %46 {strides = array<i32>} : memref<8x32xf32, #tpu.memory_space<vmem>>, vector<8x32xf32>,
    %c3_i32 = arith.constant 3 : i32
    %48 = arith.cmpi eq, %arg2, %c3_i32 : i32
    %49 = arith.extui %48 : i1 to i32
    %c0_i32_25 = arith.constant 0 : i32
    %50 = arith.cmpi ne, %49, %c0_i32_25 : i32
    scf.if %50 {
      %c0_26 = arith.constant 0 : index
      %c0_27 = arith.constant 0 : index
      %51 = vector.load %arg16[%c0_26, %c0_27] : memref<8x32xf32, #tpu.memory_space<vmem>>, vector<8x32xf32>
      %c0_28 = arith.constant 0 : index
      %c0_29 = arith.constant 0 : index
      %52 = vector.load %arg12[%c0_28, %c0_29] : memref<1x32xbf16, #tpu.memory_space<vmem>>, vector<1x32xbf16>
      %53 = arith.extf %52 : vector<1x32xbf16> to vector<1x32xf32>
      %54 = vector.broadcast %53 : vector<1x32xf32> to vector<8x32xf32>
      %55 = arith.addf %51, %54 : vector<8x32xf32>
      %c0_30 = arith.constant 0 : index
      %c0_31 = arith.constant 0 : index
      %c0_32 = arith.constant 0 : index
      %56 = vector.load %arg13[%c0_30, %c0_31, %c0_32] : memref<1x8x32xf32, #tpu.memory_space<vmem>>, vector<1x8x32xf32>
      %57 = vector.shape_cast %56 : vector<1x8x32xf32> to vector<8x32xf32>
      %58 = vector.shape_cast %55 : vector<8x32xf32> to vector<1x8x32xf32>
      tpu.vector_store %arg13[%c0_30, %c0_31, %c0_32], %58 {strides = array<i32>} : memref<1x8x32xf32, #tpu.memory_space<vmem>>, vector<1x8x32xf32>,
    } else {
    }
    return
  }
  func.func @transform_0(%arg0: i32, %arg1: i32, %arg2: i32) -> (i32, i32, i32) {
    %c0_i32 = arith.constant 0 : i32
    %c0_i32_0 = arith.constant 0 : i32
    return %arg0, %arg1, %c0_i32 : i32, i32, i32
  }
  func.func @transform_1(%arg0: i32, %arg1: i32, %arg2: i32) -> (i32, i32, i32) {
    %c0_i32 = arith.constant 0 : i32
    %c0_i32_0 = arith.constant 0 : i32
    %c0_i32_1 = arith.constant 0 : i32
    return %arg0, %c0_i32, %c0_i32_0 : i32, i32, i32
  }
  func.func @transform_2(%arg0: i32, %arg1: i32, %arg2: i32) -> (i32, i32, i32) {
    %c0_i32 = arith.constant 0 : i32
    %c0_i32_0 = arith.constant 0 : i32
    %c0_i32_1 = arith.constant 0 : i32
    %c0_i32_2 = arith.constant 0 : i32
    return %c0_i32, %c0_i32_0, %c0_i32_1 : i32, i32, i32
  }
  func.func @transform_3(%arg0: i32, %arg1: i32, %arg2: i32) -> (i32, i32, i32) {
    %c0_i32 = arith.constant 0 : i32
    %c0_i32_0 = arith.constant 0 : i32
    %c0_i32_1 = arith.constant 0 : i32
    %c0_i32_2 = arith.constant 0 : i32
    return %c0_i32, %c0_i32_0, %c0_i32_1 : i32, i32, i32
  }
  func.func @transform_4(%arg0: i32, %arg1: i32, %arg2: i32) -> (i32, i32, i32) {
    %c0_i32 = arith.constant 0 : i32
    %c0_i32_0 = arith.constant 0 : i32
    %c0_i32_1 = arith.constant 0 : i32
    %c0_i32_2 = arith.constant 0 : i32
    return %c0_i32, %c0_i32_0, %c0_i32_1 : i32, i32, i32
  }
  func.func @transform_5(%arg0: i32, %arg1: i32, %arg2: i32) -> (i32, i32, i32) {
    %c0_i32 = arith.constant 0 : i32
    %c0_i32_0 = arith.constant 0 : i32
    %c0_i32_1 = arith.constant 0 : i32
    %c0_i32_2 = arith.constant 0 : i32
    return %c0_i32, %c0_i32_0, %c0_i32_1 : i32, i32, i32
  }
  func.func @transform_6(%arg0: i32, %arg1: i32, %arg2: i32) -> (i32, i32, i32) {
    %c0_i32 = arith.constant 0 : i32
    %c0_i32_0 = arith.constant 0 : i32
    %c0_i32_1 = arith.constant 0 : i32
    %c0_i32_2 = arith.constant 0 : i32
    return %c0_i32, %c0_i32_0, %c0_i32_1 : i32, i32, i32
  }
  func.func @transform_7(%arg0: i32, %arg1: i32, %arg2: i32) -> (i32, i32, i32) {
    %c0_i32 = arith.constant 0 : i32
    %c0_i32_0 = arith.constant 0 : i32
    %c0_i32_1 = arith.constant 0 : i32
    %c0_i32_2 = arith.constant 0 : i32
    return %c0_i32, %c0_i32_0, %c0_i32_1 : i32, i32, i32
  }
  func.func @transform_8(%arg0: i32, %arg1: i32, %arg2: i32) -> (i32, i32, i32) {
    %c0_i32 = arith.constant 0 : i32
    %c0_i32_0 = arith.constant 0 : i32
    %c0_i32_1 = arith.constant 0 : i32
    %c0_i32_2 = arith.constant 0 : i32
    return %c0_i32, %c0_i32_0, %c0_i32_1 : i32, i32, i32
  }
  func.func @transform_9(%arg0: i32, %arg1: i32, %arg2: i32) -> (i32, i32) {
    %c0_i32 = arith.constant 0 : i32
    %c0_i32_0 = arith.constant 0 : i32
    %c0_i32_1 = arith.constant 0 : i32
    return %c0_i32, %c0_i32_0 : i32, i32
  }
  func.func @transform_10(%arg0: i32, %arg1: i32, %arg2: i32) -> (i32, i32, i32) {
    %c0_i32 = arith.constant 0 : i32
    %c0_i32_0 = arith.constant 0 : i32
    return %arg0, %arg1, %c0_i32 : i32, i32, i32
  }
}

</mosaic_0001>

<bundles_post_ra>
// kernel: tpu_custom_call.1
= control target key start
LH: loop header
LB: loop body
LE: loop exit
PB: predicated region body
PF: predicated region fallthrough
CT: control target
= control target key end

     0   :  { %s1504_s0 = inlined_call_operand.vmem [shape: bf16[2,8,32], index: 0, kind: input, shape index: {}]   ;;  %s1505_s1 = inlined_call_operand.vmem [shape: bf16[2,16,24], index: 1, kind: input, shape index: {}]   ;;  %s1506_s2 = inlined_call_operand.vmem [shape: bf16[4,32,8], index: 2, kind: input, shape index: {}]   ;;  %s1507_s3 = inlined_call_operand.vmem [shape: bf16[4,1,8], index: 3, kind: input, shape index: {}]   ;;  %s1508_s4 = inlined_call_operand.vmem [shape: bf16[4,24,8], index: 4, kind: input, shape index: {}]   ;;  %s1509_s5 = inlined_call_operand.vmem [shape: bf16[4,1,8], index: 5, kind: input, shape index: {}]   ;;  %s1510_s6 = inlined_call_operand.vmem [shape: bf16[4,24,8], index: 6, kind: input, shape index: {}]   ;;  %s1511_s7 = inlined_call_operand.vmem [shape: bf16[4,1,8], index: 7, kind: input, shape index: {}]   ;;  %s1512_s8 = inlined_call_operand.vmem [shape: bf16[4,8,32], index: 8, kind: input, shape index: {}]   ;;  %s1513_s9 = inlined_call_operand.vmem [shape: bf16[1,32], index: 9, kind: input, shape index: {}]   ;;  %s1514_s10 = inlined_call_operand.hbm [shape: f32[2,8,32], index: 10, kind: output, shape index: {}]  }
   0x1   :  { %1520 = sst [smem:[#allocation12_spill]] %s1504_s0 }
   0x2   :  { %15 = vsyncpa [#allocation6], 0 }
   0x3   :  { %17 = vsyncpa [#allocation6 + $0x1], 0  ;;  %s1279_s13 = smov 0   ;;  %s1281_s14 = smov 0  }
   0x4   :  { %s1283_s15 = smov 0   ;;  %s1285_s16 = smov 0  }
   0x5   :  { %s1287_s17 = smov 0   ;;  %s1289_s18 = smov 0  }
   0x6   :  { %s1291_s19 = smov 0   ;;  %s1293_s20 = smov 0  }
   0x7 LB: > { %1521 = sst [smem:[#allocation8_spill]] %s1210_s18  ;;  %s941_s21 = sadd.s32 4294967295, %s1218_s20   ;;  %s1218_s20 = sphi %s1293_s20, %s23_s20   ;;  %s1214_s19 = sphi %s1291_s19, %s1533_s19   ;;  %s1210_s18 = sphi %s1289_s18, %s1532_s18   ;;  %s1206_s17 = sphi %s1287_s17, %s1531_s17   ;;  %s1202_s16 = sphi %s1285_s16, %s1530_s16   ;;  %s1198_s15 = sphi %s1283_s15, %s1536_s15   ;;  %s1194_s14 = sphi %s1281_s14, %s1535_s14   ;;  %s1190_s13 = sphi %s1279_s13, %s1534_s13  }
   0x8   : > { %1522 = sst [smem:[#allocation9_spill]] %s1214_s19  ;;  %s942_s22 = sadd.s32 4294967294, %s1218_s20  }
   0x9   : > { %s35_s23 = sadd.s32 1, %s1210_s18  ;;  %s42_s24 = sadd.s32 1, %s1214_s19 }
   0xa   : > { %p36_p0 = scmp.ge.s32.totalorder %s35_s23, 4  ;;  %p283_p1 = scmp.ne.s32.totalorder %s1198_s15, %s1194_s14 }
   0xb   : > { %p284_p2 = scmp.eq.s32.totalorder %s941_s21, 7  ;;  %p289_p4 = scmp.ne.s32.totalorder %s1194_s14, %s1190_s13 }
   0xc   : > { %s1538_s23 = smov (%p36_p0, %s35_s23), 0  ;;  %s1540_s24 = smov (!%p36_p0, %s42_s24), %s1214_s19 }
   0xd   : > { %1523 = sst [smem:[#allocation10_spill]] %s1538_s23  ;;  %p1328_p3 = por %p284_p2, %p283_p1 }
   0xe   : > { %p44_p5 = scmp.ge.s32.totalorder %s1540_s24, 2  ;;  %p290_p6 = scmp.eq.s32.totalorder %s942_s22, 7 }
   0xf   : > { %p945_p7 = scmp.ge.s32.totalorder %s1218_s20, 1  ;;  %p350_p8 = scmp.lt.s32.totalorder %s1218_s20, 9 }
  0x10   : > { %s1542_s24 = smov (%p44_p5, %s1540_s24), 0  ;;  %p1338_p9 = por %p290_p6, %p289_p4 }
  0x11   : > { %1525 = sst [smem:[#allocation11_spill]] %s1542_s24  ;;  %p351_p10 = pnand %p945_p7, %p350_p8 }
  0x12   : > { %s268_s27 = ssub.s32 %s1214_s19, %s1542_s24  ;;  %s273_s28 = sadd.s32 1, %s1198_s15  ;;  %v1220_v0 = vmov (!%p351_p10), 0.0   ;;  %vm1221_vm0 = vmmov (!%p351_p10), 0   ;;  %vm445_vm1 = vcmask (!%p351_p10), 1043456   ;;  %vm441_vm2 = vcmask (!%p351_p10), 195584  }
  0x13   : > { %p271_p11 = scmp.eq.s32.totalorder %s268_s27, 0  ;;  %354 = sbr.rel (%p351_p10) target bundleno = 1268 (0x4f4), region = 60  ;;  %997 = vmatprep.subr.bf16.mxu0 (!%p351_p10), %v1220_v0  ;;  %1001 = vmatprep.mubr.msk.bf16.mxu0 (!%p351_p10), %vm1221_vm0, %v1220_v0  ;;  %vm591_vm3 = vcmask (!%p351_p10), 261120   ;;  %v423_v11 = vlaneseq (!%p351_p10)  ;;  %vm558_vm4 = vcmask (!%p351_p10), 64512   ;;  %vm690_vm5 = vcmask (!%p351_p10), 130048  }
  0x14   : > { %s1515_s30 = sand.u32 (!%p351_p10), 1, %s1194_s14   ;;  %s1519_s11 = smul.u32 (!%p351_p10), 12, %s1202_s16  ;;  %1005 = vmatprep.subr.bf16.mxu1 (!%p351_p10), %v1220_v0  ;;  %1009 = vmatprep.mubr.msk.bf16.mxu1 (!%p351_p10), %vm1221_vm0, %v1220_v0 }
  0x15   : > { %s1346_s29 = scalar_select %p271_p11, %s1198_s15, %s273_s28  }
  0x16   : > { %s1352_s12 = sshll.u32 (!%p351_p10), %s1515_s30, 3  ;;  %p395_p12 = scmp.lt.s32.totalorder (!%p351_p10), %s1206_s17, 1  ;;  %v424_v12 = vshrl.u32 (!%p351_p10), %v423_v11, 7 }
  0x17   : > { %s416_s27 = scalar_lea.vmem (!%p351_p10), %s1508_s4, %s1519_s11  ;;  %s981_s30 = sshll.u32 (!%p351_p10), %s1202_s16, 4 }
  0x18   : > { %v1113_v1 = vld [vmem:[%s416_s27] sm:$0xff] (!%p351_p10)   ;;  %v1114_v2 = vld [vmem:[%s416_s27 + $0x8] ss:$0 sps:$4 sm:$0xff] (!%p351_p10)   ;;  %s567_s18 = scalar_lea.vmem (!%p351_p10), %s1506_s2, %s981_s30  ;;  %s1527_s0 = sld [smem:[#allocation12_spill]] (!%p351_p10)  ;;  %v1403_v15 = vsub.s32 (!%p351_p10), 0, %v424_v12 }
  0x19   : > { %998 = vmatpush3.bf16.msra.mxu0 (!%p351_p10), %v1113_v1  ;;  %v447_v3 = vsel (!%p351_p10), %vm445_vm1, %v1114_v2, 0  ;;  %v1116_v5 = vld [vmem:[%s567_s18] sm:$0xff] (!%p351_p10)   ;;  %v1117_v6 = vld [vmem:[%s567_s18 + $0x8] sm:$0xff] (!%p351_p10)   ;;  %s1528_s18 = smul.u32 (!%p351_p10), 12, %s1202_s16  ;;  %s495_s21 = scalar_lea.vmem (!%p351_p10), %s1511_s7, %s1202_s16 }
  0x1a   : > { %s396_s28 = scalar_select %p395_p12, %s1206_s17, 1  ;;  %999 = vmatprep.subr.bf16.mxu0 %v1220_v0  ;;  %v496_v35 = vld [vmem:[%s495_s21] sm:$0x1] }
  0x1b   : > { %v497_v36 = vunpack.c.l.bf16 %v496_v35  ;;  %p970_p13 = scmp.ne.s32.totalorder %s1202_s16, 0 }
  0x1c   : > { %s978_s24 = sshll.u32 %s396_s28, 3  ;;  %s947_s27 = sshll.u32 %s396_s28, 2  ;;  %v1222_v2 = vmov (!%p970_p13), 0.0  }
  0x1d   : > { %s406_s11 = scalar_lea.vmem %s1505_s1, %s978_s24  ;;  %1000 = vmatpush3.bf16.msra.mxu0 %v447_v3  ;;  %s491_s28 = scalar_lea.vmem %s1510_s6, %s1528_s18  ;;  %v501_v37 = vrot.slane %v497_v36, %v1403_v15  ;;  %750 = vst.msk [vmem:[#allocation4] sm:$0xff] (!%p970_p13), %vm591_vm3, %v1222_v2 }
  0x1e   : > { %v1115_v4 = vld [vmem:[%s406_s11] sm:$0xff]   ;;  %1013 = vmatprep.subr.bf16.mxu0 %v1220_v0  ;;  %s401_s24 = scalar_lea.vmem %s1527_s0, %s947_s27  ;;  %v1119_v9 = vld [vmem:[%s491_s28 + $0x8] ss:$0 sps:$4 sm:$0xff]   ;;  %s420_s27 = scalar_lea.vmem %s1509_s5, %s1202_s16 }
  0x1f   : > { %v564_v7 = vld [vmem:[%s401_s24] sm:$0xf]  ;;  %v512_v10 = vsel %vm445_vm1, %v1119_v9, 0  ;;  %s572_s24 = scalar_lea.vmem %s1507_s3, %s1202_s16  ;;  %s959_s18 = sshll.u32 %s1202_s16, 3 }
  0x20   : > { %1002 = vmatmul.mubr.msk.bf16.vlgmr.msra.gmra.mrb[0].mxu0 %vm441_vm2, %v1115_v4  ;;  %v1118_v8 = vld [vmem:[%s491_s28] sm:$0xff]   ;;  %s557_s30 = scalar_lea.vmem [#allocation2], %s959_s18  ;;  %s562_s22 = scalar_lea.vmem [#allocation3], %s959_s18 }
  0x21   : > { %1014 = vmatpush3.bf16.msra.mxu0 %v1116_v5  ;;  %1017 = vmatprep.mubr.msk.bf16.mxu0 %vm1221_vm0, %v1220_v0  ;;  %v421_v13 = vld [vmem:[%s420_s27] sm:$0x1]  ;;  %s394_s27 = scalar_lea.vmem [#allocation5], %s1352_s12 }
  0x22   : > { %1015 = vmatprep.subr.bf16.mxu0 %v1220_v0  ;;  %1006 = vmatpush3.bf16.msra.mxu1 %v1118_v8  ;;  %v422_v14 = vunpack.c.l.bf16 %v421_v13  ;;  %v573_v23 = vld [vmem:[%s572_s24] sm:$0x1] }
  0x23   : > { %1007 = vmatprep.subr.bf16.mxu1 %v1220_v0  ;;  %v574_v25 = vunpack.c.l.bf16 %v573_v23 }
  0x24   : > { %v426_v16 = vrot.slane %v422_v14, %v1403_v15 }
  0x25   : > { %1016 = vmatpush3.bf16.msra.mxu0 %v1117_v6  ;;  %v578_v29 = vrot.slane %v574_v25, %v1403_v15 }
  0x26   : > { %1027 = vmatprep.subr.bf16.mxu0 %v1220_v0  ;;  %1008 = vmatpush3.bf16.msra.mxu1 %v512_v10 }
  0x27   : > { %1021 = vmatprep.subr.bf16.mxu1 %v1220_v0 }
  0x28   : > { %1018 = vmatmul.mubr.msk.bf16.vlgmr.msra.gmra.mrb[4].mxu0 %vm591_vm3, %v564_v7 }
  0x29   : > { %1029 = vmatprep.mubr.msk.bf16.mxu0 %vm1221_vm0, %v1220_v0  ;;  %1010 = vmatmul.mubr.msk.bf16.vlgmr.msra.gmra.mrb[0].mxu1 %vm441_vm2, %v1115_v4 }
  0x2a   : > { %1023 = vmatprep.mubr.msk.bf16.mxu1 %vm1221_vm0, %v1220_v0 }
  0xf3   : > { %v483_v17 = vpop.f32.mrb[0].mxu0 }
  0xf4   : > { %v1003_v18 = vpop.f32.mrb[1].mxu0  ;;  %v484_v20 = vadd.f32 %v483_v17, %v426_v16 }
  0xf5   : > { %v486_v19 = vpop.f32.mrb[2].mxu0 }
  0xf6   : > { %v487_v21 = vadd.f32 %v486_v19, %v426_v16  ;;  %v1004_v22 = vpop.f32.mrb[3].mxu0 }
  0xf8   : > { %v555_v24 = vpack.c.bf16 %v487_v21, %v484_v20 }
  0xfa   : > { %559 = vst.msk [vmem:[%s557_s30] sm:$0xff] %vm558_vm4, %v555_v24 }
  0xfb   : > { %v629_v26 = vpop.f32.mrb[4].mxu0 }
  0xfc   : > { %v1019_v27 = vpop.f32.mrb[5].mxu0  ;;  %v630_v32 = vadd.f32 %v629_v26, %v578_v29  ;;  %v548_v38 = vpop.f32.mrb[0].mxu1 }
  0xfd   : > { %v632_v28 = vpop.f32.mrb[6].mxu0  ;;  %v549_v39 = vadd.f32 %v548_v38, %v501_v37  ;;  %v1011_v40 = vpop.f32.mrb[1].mxu1 }
  0xfe   : > { %v1020_v30 = vpop.f32.mrb[7].mxu0  ;;  %v635_v34 = vpack.c.bf16 %v630_v32, %v630_v32  ;;  %v551_v41 = vpop.f32.mrb[2].mxu1 }
  0xff   : > { %v552_v42 = vadd.f32 %v551_v41, %v501_v37  ;;  %v1012_v43 = vpop.f32.mrb[3].mxu1 }
 0x101   : > { %v638_v31 = vld [vmem:[%s557_s30] sm:$0xff]  ;;  %v560_v44 = vpack.c.bf16 %v552_v42, %v549_v39 }
 0x102   : > { %v647_v33 = vsel %vm558_vm4, %v638_v31, 0 }
 0x103   : > { %1022 = vmatpush3.bf16.xpose.msra.mxu1 %v647_v33  ;;  %563 = vst.msk [vmem:[%s562_s22] sm:$0xff] %vm558_vm4, %v560_v44 }
 0x10a   : > { %1024 = vmatmul.mubr.msk.bf16.vlgmr.msra.gmra.mrb[4].mxu1 %vm558_vm4, %v635_v34  ;;  %v641_v45 = vld [vmem:[%s562_s22] sm:$0xff] }
 0x10b   : > { %1028 = vmatpush3.bf16.msra.mxu0 %v641_v45 }
 0x1dd   : > { %v683_v46 = vpop.f32.mrb[4].mxu1 }
 0x1de   : > { %v689_v47 = vmul.f32 0.35355338, %v683_v46  ;;  %v1025_v48 = vpop.f32.mrb[5].mxu1 }
 0x1df   : > { %v686_v49 = vpop.f32.mrb[6].mxu1 }
 0x1e0   : > { %v1026_v50 = vpop.f32.mrb[7].mxu1  ;;  %v691_v51 = vsel %vm690_vm5, %v689_v47, -inf }
 0x1e1   : > { %692 = vmax.xlane.f32.xlu0 %v691_v51 }
 0x26e   : > { %v693_v52 = vpop.xlane.xlu0 %692 }
 0x26f   : > { %v694_v53 = vsub.f32 %v689_v47, %v693_v52 }
 0x271   : > { %v695_v54 = vmul.f32 1.442695, %v694_v53 }
 0x273   : > { %1120 = vpow2.f32 %v695_v54 }
 0x27d   : > { %v1121_v55 = vpop.eup %1120 }
 0x27e   : > { %v697_v56 = vsel %vm690_vm5, %v1121_v55, 0.0 }
 0x27f   : > { %698 = vadd.xlane.f32.xlu0 %v697_v56 }
 0x30c   : > { %v699_v57 = vpop.xlane.xlu0 %698 }
 0x30d   : > { %1122 = vrcp.f32 %v699_v57 }
 0x317   : > { %v1123_v58 = vpop.eup %1122 }
 0x318   : > { %v701_v59 = vmul.f32 %v1123_v58, %v1121_v55 }
 0x31a   : > { %v702_v60 = vpack.c.bf16 %v701_v59, %v701_v59 }
 0x31c   : > { %1030 = vmatmul.mubr.msk.bf16.vlgmr.msra.gmra.mrb[8].mxu0 %vm690_vm5, %v702_v60 }
 0x3ec   : > { %749 = sbr.rel (%p970_p13) target bundleno = 1011 (0x3f3), region = 68 }
 0x3ef   : > { %v740_v61 = vpop.f32.mrb[8].mxu0 }
 0x3f0   : > { %v1031_v62 = vpop.f32.mrb[9].mxu0 }
 0x3f1   : > { %v743_v63 = vpop.f32.mrb[10].mxu0 }
 0x3f2   : > { %v1032_v1 = vpop.f32.mrb[11].mxu0 }
 0x3f3 PF: > { %1033 = vmatprep.subr.bf16.mxu1 %v1220_v0  ;;  %s971_s19 = sshll.u32 %s1202_s16, 2  ;;  %1035 = vmatprep.mubr.msk.bf16.mxu1 %vm1221_vm0, %v1220_v0  ;;  %v752_v5 = vpack.c.bf16 %v740_v61, %v740_v61  ;;  %v751_v6 = vld [vmem:[#allocation4] sm:$0xff]  ;;  %p973_p0 = scmp.ne.s32.totalorder %s1202_s16, 3 }
 0x3f4   : > { %s754_s18 = scalar_lea.vmem %s1512_s8, %s971_s19  ;;  %v810_v0 = vld [vmem:[%s1513_s9] sm:$0x1] (!%p973_p0) }
 0x3f5   : > { %v755_v3 = vld [vmem:[%s754_s18] sm:$0xf]  ;;  %v811_v12 = vunpack.c.l.bf16 (!%p973_p0), %v810_v0 }
 0x3f6   : > { %v761_v4 = vsel %vm445_vm1, %v755_v3, 0 }
 0x3f7   : > { %1034 = vmatpush3.bf16.msra.mxu1 %v761_v4  ;;  %v815_v14 = vrot.slane (!%p973_p0), %v811_v12, %v1403_v15 }
 0x3fa   : > { %1036 = vmatmul.mubr.msk.bf16.vlgmr.msra.gmra.mrb[8].mxu1 %vm558_vm4, %v752_v5 }
 0x4ca   : > { %808 = sbr.rel (%p973_p0) target bundleno = 1243 (0x4db), region = 72 }
 0x4cd   : > { %v797_v7 = vpop.f32.mrb[8].mxu1 }
 0x4ce   : > { %v803_v8 = vadd.f32 %v797_v7, %v751_v6  ;;  %v1037_v9 = vpop.f32.mrb[9].mxu1 }
 0x4cf   : > { %v800_v10 = vpop.f32.mrb[10].mxu1 }
 0x4d0   : > { %804 = vst.msk [vmem:[#allocation4] sm:$0xff] %vm591_vm3, %v803_v8  ;;  %v1038_v11 = vpop.f32.mrb[11].mxu1 }
 0x4d7   : > { %v809_v13 = vld [vmem:[#allocation4] sm:$0xff] }
 0x4d8   : > { %v816_v16 = vadd.f32 %v815_v14, %v809_v13 }
 0x4da   : > { %817 = vst.msk [vmem:[%s394_s27] sm:$0xff] %vm591_vm3, %v816_v16 }
 0x4db PF: > { %s975_s16 = sshll.u32 %s1206_s17, 7  ;;  %s833_s19 = sshll.u32 %s394_s27, 4  ;;  %s834_s19 = int_to_ptr.vmem [resolvable:$true] %s833_s19 }
 0x4dc   : > { %s1453_s22 = scalar_lea.hbm %s1514_s10, %s975_s16  ;;  %s1529_s23 = sand.u32 1, %s1194_s14  }
 0x4dd   : > { %s819_s24 = scalar_lea.sflag [#allocation6], %s1529_s23  ;;  %s1124_s18 = scalar_lea.vmem %s834_s19, 128 }
 0x4de   : > { %p1125_p1 = scmp.ne.s32.totalorder %s834_s19, %s1124_s18  ;;  %s1223_s30 = smov [#allocation5]  }
 0x4df   : > { %s1128_s11 = sshll.u32 %s1223_s30, 4  ;;  %s1129_s11 = int_to_ptr.vmem [resolvable:$false] %s1128_s11 }
 0x4e0   : > { %p1126_p2 = pnand %p1125_p1, %p1328_p3  ;;  %s1130_s0 = scalar_lea.vmem %s1129_s11, 256 }
 0x4e1   : > { %p1131_p5 = scmp.lt.s32.totalorder %s834_s19, %s1129_s11  ;;  %p1132_p6 = scmp.lt.s32.totalorder %s1130_s0, %s1124_s18 }
 0x4e2   : > { %p1127_p4 = pneg %p1126_p2 }
 0x4e3   : > { %p1133_p7 = por %p1132_p6, %p1131_p5 }
 0x4e5   : > { %p1134_p8 = pnand %p1133_p7, %p1127_p4 }
 0x4e7   : > { %1137 = shalt.err (!%p1134_p8)
}
 0x4e8   : > { %s1138_s17 = scalar_lea.hbm %s1453_s22, 128  ;;  %s1142_s16 = scalar_lea.hbm %s1514_s10, 256 }
 0x4e9   : > { %p1139_p10 = scmp.ne.s32.totalorder %s1453_s22, %s1138_s17  ;;  %p1143_p13 = scmp.lt.u32.totalorder %s1453_s22, %s1514_s10 }
 0x4ea   : > { %p1144_p0 = scmp.lt.u32.totalorder %s1142_s16, %s1138_s17  ;;  %p1146_p2 = scmp.lt.u32.totalorder %s1138_s17, %s1453_s22 }
 0x4eb   : > { %p1140_p11 = pnand %p1139_p10, %p1328_p3 }
 0x4ec   : > { %p1145_p1 = por %p1144_p0, %p1143_p13 }
 0x4ed   : > { %p1141_p12 = pneg %p1140_p11 }
 0x4ee   : > { %p1147_p4 = por %p1146_p2, %p1145_p1 }
 0x4f0   : > { %p1148_p5 = pnand %p1147_p4, %p1141_p12 }
 0x4f2   : > { %1151 = shalt.err (!%p1148_p5)
}
 0x4f3   : > { %1039 = dma.vmem_to_hbm [thread:$0]  (%p1328_p3), %s834_s19, 128, %s1453_s22, %s819_s24  }
 0x4f4 PF: > { %p1045_p6 = scmp.ge.s32.totalorder %s1218_s20, 2  ;;  %s845_s0 = sand.u32 1, %s1190_s13  }
 0x4f5   : > { %s846_s23 = scalar_lea.sflag [#allocation6], %s845_s0 }
 0x4f6   : > { %p1042_p7 = pnand %p1045_p6, %p1338_p9 }
 0x4f8   : > { %1185 = dma.done.wait (!%p1042_p7), %s846_s23, 128  }
 0x4f9   : > { %1187 = vsyncadd (!%p1042_p7), %s846_s23, 4294967168  ;;  %s23_s20 = sadd.s32 1, %s1218_s20   ;;  %s1530_s16 = sld [smem:[#allocation8_spill]] }
 0x4fa   : > { %p20_p8 = scmp.ge.s32.totalorder %s23_s20, 10   ;;  %s1531_s17 = sld [smem:[#allocation9_spill]] }
 0x4fb   : > { %s1532_s18 = sld [smem:[#allocation10_spill]]  ;;  %s1533_s19 = sld [smem:[#allocation11_spill]] }
 0x4fc   : > { %s1534_s13 = smov %s1194_s14  ;;  %s1535_s14 = smov %s1198_s15 }
 0x4fd   : > { %s1536_s15 = smov %s1346_s29  ;;  %22 = sbr.rel (!%p20_p8) target bundleno = 7 (0x7), region = 121 }
 0x504   :  { %851 = vsyncpa [#allocation6], 1 }
 0x505   :  { %853 = vsyncpa [#allocation6 + $0x1], 1 }

</bundles_post_ra>
